<compile_context>
chip_gen: v5e
topology: v5e:2x2
jax: 0.10.0
libtpu: 0.0.40
codegen_flags: <defaults>
</compile_context>

<pallas_src>
import jax
import jax.numpy as jnp
from jax import lax
from jax.experimental import pallas as pl
from jax.experimental.pallas import tpu as pltpu


def _round_up(x, m):
    return (x + m - 1) // m * m


# ---------------------------------------------------------------------------
# Shared tail: fused embedding rows -> GMF + MLP -> NeuMF layer -> sigmoid.
# ---------------------------------------------------------------------------
def _neumf_tail(ue, ie, w1u_ref, w1i_ref, b1_ref, w2_ref, b2_ref,
                wng_ref, wnm_ref, bn_ref, out_ref):
    # ue / ie: (TB, F) fused rows; lanes [0:Eg]=gmf, [Eg:Eg+Em]=mlp, rest zero.
    prod = ue * ie                                   # GMF product lives in gmf lanes (VPU)

    # concat(mlp_u, mlp_i) @ W1 == ue @ W1u_pad + ie @ W1i_pad (zero-padded weights)
    h = (jnp.dot(ue, w1u_ref[...], preferred_element_type=jnp.float32)
         + jnp.dot(ie, w1i_ref[...], preferred_element_type=jnp.float32)
         + b1_ref[...])                                                  # (TB, L1)
    h = jnp.maximum(h, 0.0)
    h = jnp.maximum(
        jnp.dot(h, w2_ref[...], preferred_element_type=jnp.float32) + b2_ref[...],
        0.0)                                                             # (TB, L2)

    # concat(gmf, h) @ Wn^T == Wn_gmf_pad @ prod^T + Wn_mlp @ h^T -> already (1, TB)
    logit = (lax.dot_general(wng_ref[...], prod, (((1,), (1,)), ((), ())),
                             preferred_element_type=jnp.float32)
             + lax.dot_general(wnm_ref[...], h, (((1,), (1,)), ((), ())),
                               preferred_element_type=jnp.float32)
             + bn_ref[...])                                              # (1, TB)

    # Sigmoid, lane-dense store.
    out_ref[...] = 1.0 / (1.0 + jnp.exp(-logit))


# ---------------------------------------------------------------------------
# Small-vocab path: one-hot MXU gather (ids arrive as (TB, 1) VMEM columns).
# ---------------------------------------------------------------------------
def _neumf_onehot_kernel(uid_ref, iid_ref, user_tab, item_tab,
                         w1u_ref, w1i_ref, b1_ref, w2_ref, b2_ref,
                         wng_ref, wnm_ref, bn_ref, out_ref):
    TB = out_ref.shape[1]
    U = user_tab.shape[0]
    I = item_tab.shape[0]
    u_oh = (lax.broadcasted_iota(jnp.int32, (TB, U), 1) == uid_ref[...]).astype(jnp.float32)
    i_oh = (lax.broadcasted_iota(jnp.int32, (TB, I), 1) == iid_ref[...]).astype(jnp.float32)
    ue = jnp.dot(u_oh, user_tab[...], preferred_element_type=jnp.float32)   # (TB, F)
    ie = jnp.dot(i_oh, item_tab[...], preferred_element_type=jnp.float32)   # (TB, F)
    _neumf_tail(ue, ie, w1u_ref, w1i_ref, b1_ref, w2_ref, b2_ref,
                wng_ref, wnm_ref, bn_ref, out_ref)


# ---------------------------------------------------------------------------
# Large-vocab path: scalar-prefetch ids (SMEM) drive a per-row VMEM gather.
# ---------------------------------------------------------------------------
def _neumf_gather_kernel(uid_ref, iid_ref,                    # SMEM (Bp,) ids
                         user_tab, item_tab,
                         w1u_ref, w1i_ref, b1_ref, w2_ref, b2_ref,
                         wng_ref, wnm_ref, bn_ref,
                         out_ref, ue_s, ie_s):
    TB = out_ref.shape[1]
    base = pl.program_id(0) * TB

    def gather(b, carry):
        u = uid_ref[base + b]
        i = iid_ref[base + b]
        ue_s[pl.ds(b, 1), :] = user_tab[pl.ds(u, 1), :]       # one full-vreg row per user
        ie_s[pl.ds(b, 1), :] = item_tab[pl.ds(i, 1), :]       # one full-vreg row per item
        return carry

    lax.fori_loop(0, TB, gather, 0, unroll=min(16, TB))
    _neumf_tail(ue_s[...], ie_s[...], w1u_ref, w1i_ref, b1_ref, w2_ref, b2_ref,
                wng_ref, wnm_ref, bn_ref, out_ref)


def neumf_forward(batch, params, *, block_b=256, use_onehot=None):
    """Equivalent of NeuralMatrixFactorizationBCEModel.forward(batch) -> (B,) probs."""
    gmf_user, gmf_item, mlp_user, mlp_item, w1, b1, w2, b2, wn, bn = params

    uid = batch[:, 0].astype(jnp.int32)
    iid = batch[:, 1].astype(jnp.int32)
    B = uid.shape[0]
    U, Eg = gmf_user.shape
    I = gmf_item.shape[0]
    Em = mlp_user.shape[1]
    L1 = w1.shape[1]
    L2 = w2.shape[1]
    F = _round_up(Eg + Em, 128)          # fused row width -> full 128-lane vregs

    f32 = jnp.float32
    # Fused per-entity tables: one gathered row per user / item.
    user_tab = (jnp.zeros((U, F), f32)
                .at[:, :Eg].set(gmf_user.astype(f32))
                .at[:, Eg:Eg + Em].set(mlp_user.astype(f32)))
    item_tab = (jnp.zeros((I, F), f32)
                .at[:, :Eg].set(gmf_item.astype(f32))
                .at[:, Eg:Eg + Em].set(mlp_item.astype(f32)))

    # Zero-padded weights: kernel consumes fused rows with no lane slicing/concat.
    w1u = jnp.zeros((F, L1), f32).at[Eg:Eg + Em, :].set(w1[:Em].astype(f32))
    w1i = jnp.zeros((F, L1), f32).at[Eg:Eg + Em, :].set(w1[Em:].astype(f32))
    wn_g = jnp.zeros((1, F), f32).at[:, :Eg].set(wn[:, :Eg].astype(f32))
    wn_m = wn[:, Eg:].astype(f32)                       # (1, L2)
    w2_f = w2.astype(f32)
    b1_2d = b1.reshape(1, L1).astype(f32)
    b2_2d = b2.reshape(1, L2).astype(f32)
    bn_2d = bn.reshape(1, 1).astype(f32)

    # Batch tile: lane-dense 128-multiple tiles for big batches; keep >= 2 grid
    # tiles when B allows so "parallel" batch tiles can split across v7x's 2 TCs.
    if B <= 128:
        TB = _round_up(B, 8)
    else:
        bb = max(128, (block_b // 128) * 128)
        TB = max(128, min(bb, 128 * max(1, pl.cdiv(B, 128) // 2)))
    Bp = _round_up(B, TB)
    if Bp != B:
        pad = Bp - B
        uid = jnp.concatenate([uid, jnp.zeros((pad,), jnp.int32)])
        iid = jnp.concatenate([iid, jnp.zeros((pad,), jnp.int32)])
    nt = Bp // TB

    if use_onehot is None:
        # One-hot gather is O(B*U): only a win for small vocabularies.
        use_onehot = (U <= 512) and (I <= 512)

    # Scoped-VMEM budget: resident tables (x2 buffering) + scratch + headroom.
    vmem_need = 4 * (2 * (user_tab.size + item_tab.size) + 2 * TB * F) + (8 << 20)
    vmem_limit = int(min(max(vmem_need, 32 << 20), 64 << 20))
    compiler_params = pltpu.CompilerParams(
        dimension_semantics=("parallel",),
        vmem_limit_bytes=vmem_limit,
    )
    out_shape = jax.ShapeDtypeStruct((1, Bp), jnp.float32)

    if use_onehot:
        const = lambda t: (0, 0)
        grid_spec = pltpu.PrefetchScalarGridSpec(
            num_scalar_prefetch=0,
            grid=(nt,),
            in_specs=[
                pl.BlockSpec((TB, 1), lambda t: (t, 0)),    # user ids (column)
                pl.BlockSpec((TB, 1), lambda t: (t, 0)),    # item ids (column)
                pl.BlockSpec((U, F), const),                # fused user table
                pl.BlockSpec((I, F), const),                # fused item table
                pl.BlockSpec((F, L1), const),               # W1 user half (0-padded)
                pl.BlockSpec((F, L1), const),               # W1 item half (0-padded)
                pl.BlockSpec((1, L1), const),               # b1
                pl.BlockSpec((L1, L2), const),              # W2
                pl.BlockSpec((1, L2), const),               # b2
                pl.BlockSpec((1, F), const),                # Wn gmf half (0-padded)
                pl.BlockSpec((1, L2), const),               # Wn mlp half
                pl.BlockSpec((1, 1), const),                # bn
            ],
            out_specs=pl.BlockSpec((1, TB), lambda t: (0, t)),
        )
        out = pl.pallas_call(
            _neumf_onehot_kernel,
            out_shape=out_shape,
            grid_spec=grid_spec,
            compiler_params=compiler_params,
        )(uid.reshape(Bp, 1), iid.reshape(Bp, 1),
          user_tab, item_tab, w1u, w1i, b1_2d, w2_f, b2_2d, wn_g, wn_m, bn_2d)
    else:
        const = lambda t, uids, iids: (0, 0)
        grid_spec = pltpu.PrefetchScalarGridSpec(
            num_scalar_prefetch=2,                           # ids -> SMEM
            grid=(nt,),
            in_specs=[
                pl.BlockSpec((U, F), const),
                pl.BlockSpec((I, F), const),
                pl.BlockSpec((F, L1), const),
                pl.BlockSpec((F, L1), const),
                pl.BlockSpec((1, L1), const),
                pl.BlockSpec((L1, L2), const),
                pl.BlockSpec((1, L2), const),
                pl.BlockSpec((1, F), const),
                pl.BlockSpec((1, L2), const),
                pl.BlockSpec((1, 1), const),
            ],
            out_specs=pl.BlockSpec((1, TB), lambda t, uids, iids: (0, t)),
            scratch_shapes=[
                pltpu.VMEM((TB, F), jnp.float32),            # gathered fused user rows
                pltpu.VMEM((TB, F), jnp.float32),            # gathered fused item rows
            ],
        )
        out = pl.pallas_call(
            _neumf_gather_kernel,
            out_shape=out_shape,
            grid_spec=grid_spec,
            compiler_params=compiler_params,
        )(uid, iid,
          user_tab, item_tab, w1u, w1i, b1_2d, w2_f, b2_2d, wn_g, wn_m, bn_2d)

    return out[0, :B]


if __name__ == "__main__":
    # Module config (matches PyTorch defaults) at small sizes.
    user_count, item_count = 64, 96
    gmf_E, mlp_E = 40, 40
    layers = (20, 10)
    B = 256

    key = jax.random.PRNGKey(0)
    keys = jax.random.split(key, 13)
    u01 = lambda k, shape: jax.random.uniform(k, shape, jnp.float32, -0.01, 0.01)

    # initialize_weights(): every parameter ~ U(-0.01, 0.01)
    gmf_user = u01(keys[0], (user_count, gmf_E))
    gmf_item = u01(keys[1], (item_count, gmf_E))
    mlp_user = u01(keys[2], (user_count, mlp_E))
    mlp_item = u01(keys[3], (item_count, mlp_E))
    w1 = u01(keys[4], (2 * mlp_E, layers[0]))      # stored (in, out)
    b1 = u01(keys[5], (layers[0],))
    w2 = u01(keys[6], (layers[0], layers[1]))
    b2 = u01(keys[7], (layers[1],))
    wn = u01(keys[8], (1, gmf_E + layers[1]))      # NeuMF layer weight (out=1, in=50)
    bn = u01(keys[9], (1,))

    userids = jax.random.randint(keys[10], (B,), 0, user_count, jnp.int32)
    itemids = jax.random.randint(keys[11], (B,), 0, item_count, jnp.int32)
    ratings = jax.random.randint(keys[12], (B,), 0, 2, jnp.int32)
    batch = jnp.stack([userids, itemids, ratings], axis=1)   # (B, 3) int32

    params = (gmf_user, gmf_item, mlp_user, mlp_item, w1, b1, w2, b2, wn, bn)

    # Pure-JAX reference with identical semantics to the torch module's forward.
    def reference(bt):
        u = bt[:, 0]; i = bt[:, 1]
        gmf = gmf_user[u] * gmf_item[i]
        h = jnp.concatenate([mlp_user[u], mlp_item[i]], axis=1)
        h = jnp.maximum(h @ w1 + b1, 0.0)
        h = jnp.maximum(h @ w2 + b2, 0.0)
        x = jnp.concatenate([gmf, h], axis=1)
        return 1.0 / (1.0 + jnp.exp(-(x @ wn[0] + bn[0])))

    # 1) Default path (small vocab -> one-hot MXU gather), B multiple of the tile.
    pred = jax.block_until_ready(neumf_forward(batch, params))
    ref = reference(batch)
    assert pred.shape == (B,)
    assert jnp.allclose(pred, ref, atol=5e-6, rtol=1e-5), (pred[:5], ref[:5])

    # 2) Large-vocab path (scalar-prefetch SMEM gather loop).
    pred_g = jax.block_until_ready(neumf_forward(batch, params, use_onehot=False))
    assert jnp.allclose(pred_g, ref, atol=5e-6, rtol=1e-5), (pred_g[:5], ref[:5])

    # 3) Ragged batch (padding path, B not a multiple of the tile).
    pred_r = jax.block_until_ready(neumf_forward(batch[:200], params))
    assert pred_r.shape == (200,)
    assert jnp.allclose(pred_r, ref[:200], atol=5e-6, rtol=1e-5), (pred_r[:5], ref[:5])

    print("KERNEL_OK")
</pallas_src>

<mosaic_0001>
module attributes {stable_mosaic.version = 11 : i64} {
  func.func @_neumf_onehot_kernel(%arg0: i32, %arg1: memref<128x1xi32, #tpu.memory_space<vmem>>, %arg2: memref<128x1xi32, #tpu.memory_space<vmem>>, %arg3: memref<64x128xf32, #tpu.memory_space<vmem>>, %arg4: memref<96x128xf32, #tpu.memory_space<vmem>>, %arg5: memref<128x20xf32, #tpu.memory_space<vmem>>, %arg6: memref<128x20xf32, #tpu.memory_space<vmem>>, %arg7: memref<1x20xf32, #tpu.memory_space<vmem>>, %arg8: memref<20x10xf32, #tpu.memory_space<vmem>>, %arg9: memref<1x10xf32, #tpu.memory_space<vmem>>, %arg10: memref<1x128xf32, #tpu.memory_space<vmem>>, %arg11: memref<1x10xf32, #tpu.memory_space<vmem>>, %arg12: memref<1x1xf32, #tpu.memory_space<vmem>>, %arg13: memref<1x128xf32, #tpu.memory_space<vmem>>) attributes {dimension_semantics = [#tpu.dimension_semantics<parallel>], iteration_bounds = array<i64: 2>, scalar_prefetch = 0 : i64, scratch_operands = 0 : i64, tpu.core_type = #tpu.core_type<tc>, window_params = [{transform_indices = @transform_0, window_bounds = array<i64: 128, 1>}, {transform_indices = @transform_1, window_bounds = array<i64: 128, 1>}, {pipeline_mode = #tpu.pipeline_mode<synchronous>, transform_indices = @transform_2, window_bounds = array<i64: 64, 128>}, {pipeline_mode = #tpu.pipeline_mode<synchronous>, transform_indices = @transform_3, window_bounds = array<i64: 96, 128>}, {pipeline_mode = #tpu.pipeline_mode<synchronous>, transform_indices = @transform_4, window_bounds = array<i64: 128, 20>}, {pipeline_mode = #tpu.pipeline_mode<synchronous>, transform_indices = @transform_5, window_bounds = array<i64: 128, 20>}, {pipeline_mode = #tpu.pipeline_mode<synchronous>, transform_indices = @transform_6, window_bounds = array<i64: 1, 20>}, {pipeline_mode = #tpu.pipeline_mode<synchronous>, transform_indices = @transform_7, window_bounds = array<i64: 20, 10>}, {pipeline_mode = #tpu.pipeline_mode<synchronous>, transform_indices = @transform_8, window_bounds = array<i64: 1, 10>}, {pipeline_mode = #tpu.pipeline_mode<synchronous>, transform_indices = @transform_9, window_bounds = array<i64: 1, 128>}, {pipeline_mode = #tpu.pipeline_mode<synchronous>, transform_indices = @transform_10, window_bounds = array<i64: 1, 10>}, {pipeline_mode = #tpu.pipeline_mode<synchronous>, transform_indices = @transform_11, window_bounds = array<i64: 1, 1>}, {transform_indices = @transform_12, window_bounds = array<i64: 1, 128>}]} {
    %0 = tpu.iota {dimensions = array<i32: 1>} : vector<128x64xi32>
    %c0 = arith.constant 0 : index
    %c0_0 = arith.constant 0 : index
    %1 = vector.load %arg1[%c0, %c0_0] : memref<128x1xi32, #tpu.memory_space<vmem>>, vector<128x1xi32>
    %2 = vector.broadcast %1 : vector<128x1xi32> to vector<128x64xi32>
    %3 = arith.cmpi eq, %0, %2 : vector<128x64xi32>
    %4 = arith.extui %3 : vector<128x64xi1> to vector<128x64xi32>
    %5 = arith.sitofp %4 : vector<128x64xi32> to vector<128x64xf32>
    %6 = tpu.iota {dimensions = array<i32: 1>} : vector<128x96xi32>
    %c0_1 = arith.constant 0 : index
    %c0_2 = arith.constant 0 : index
    %7 = vector.load %arg2[%c0_1, %c0_2] : memref<128x1xi32, #tpu.memory_space<vmem>>, vector<128x1xi32>
    %8 = vector.broadcast %7 : vector<128x1xi32> to vector<128x96xi32>
    %9 = arith.cmpi eq, %6, %8 : vector<128x96xi32>
    %10 = arith.extui %9 : vector<128x96xi1> to vector<128x96xi32>
    %11 = arith.sitofp %10 : vector<128x96xi32> to vector<128x96xf32>
    %c0_3 = arith.constant 0 : index
    %c0_4 = arith.constant 0 : index
    %12 = vector.load %arg3[%c0_3, %c0_4] : memref<64x128xf32, #tpu.memory_space<vmem>>, vector<64x128xf32>
    %cst = arith.constant dense<0.000000e+00> : vector<128x128xf32>
    %13 = tpu.matmul %5, %12, %cst {dimension_numbers = #tpu.dot_dimension_numbers<[1], [0], [0], [1], [0, 0, 1, 1], [], []>} : vector<128x64xf32>, vector<64x128xf32>, vector<128x128xf32> -> vector<128x128xf32>
    %c0_5 = arith.constant 0 : index
    %c0_6 = arith.constant 0 : index
    %14 = vector.load %arg4[%c0_5, %c0_6] : memref<96x128xf32, #tpu.memory_space<vmem>>, vector<96x128xf32>
    %cst_7 = arith.constant dense<0.000000e+00> : vector<128x128xf32>
    %15 = tpu.matmul %11, %14, %cst_7 {dimension_numbers = #tpu.dot_dimension_numbers<[1], [0], [0], [1], [0, 0, 1, 1], [], []>} : vector<128x96xf32>, vector<96x128xf32>, vector<128x128xf32> -> vector<128x128xf32>
    %16 = arith.mulf %13, %15 : vector<128x128xf32>
    %c0_8 = arith.constant 0 : index
    %c0_9 = arith.constant 0 : index
    %17 = vector.load %arg5[%c0_8, %c0_9] : memref<128x20xf32, #tpu.memory_space<vmem>>, vector<128x20xf32>
    %cst_10 = arith.constant dense<0.000000e+00> : vector<128x20xf32>
    %18 = tpu.matmul %13, %17, %cst_10 {dimension_numbers = #tpu.dot_dimension_numbers<[1], [0], [0], [1], [0, 0, 1, 1], [], []>} : vector<128x128xf32>, vector<128x20xf32>, vector<128x20xf32> -> vector<128x20xf32>
    %c0_11 = arith.constant 0 : index
    %c0_12 = arith.constant 0 : index
    %19 = vector.load %arg6[%c0_11, %c0_12] : memref<128x20xf32, #tpu.memory_space<vmem>>, vector<128x20xf32>
    %cst_13 = arith.constant dense<0.000000e+00> : vector<128x20xf32>
    %20 = tpu.matmul %15, %19, %cst_13 {dimension_numbers = #tpu.dot_dimension_numbers<[1], [0], [0], [1], [0, 0, 1, 1], [], []>} : vector<128x128xf32>, vector<128x20xf32>, vector<128x20xf32> -> vector<128x20xf32>
    %21 = arith.addf %18, %20 : vector<128x20xf32>
    %c0_14 = arith.constant 0 : index
    %c0_15 = arith.constant 0 : index
    %22 = vector.load %arg7[%c0_14, %c0_15] : memref<1x20xf32, #tpu.memory_space<vmem>>, vector<1x20xf32>
    %23 = vector.broadcast %22 : vector<1x20xf32> to vector<128x20xf32>
    %24 = arith.addf %21, %23 : vector<128x20xf32>
    %cst_16 = arith.constant 0.000000e+00 : f32
    %25 = vector.broadcast %cst_16 : f32 to vector<128x20xf32>
    %26 = arith.maximumf %24, %25 : vector<128x20xf32>
    %c0_17 = arith.constant 0 : index
    %c0_18 = arith.constant 0 : index
    %27 = vector.load %arg8[%c0_17, %c0_18] : memref<20x10xf32, #tpu.memory_space<vmem>>, vector<20x10xf32>
    %cst_19 = arith.constant dense<0.000000e+00> : vector<128x10xf32>
    %28 = tpu.matmul %26, %27, %cst_19 {dimension_numbers = #tpu.dot_dimension_numbers<[1], [0], [0], [1], [0, 0, 1, 1], [], []>} : vector<128x20xf32>, vector<20x10xf32>, vector<128x10xf32> -> vector<128x10xf32>
    %c0_20 = arith.constant 0 : index
    %c0_21 = arith.constant 0 : index
    %29 = vector.load %arg9[%c0_20, %c0_21] : memref<1x10xf32, #tpu.memory_space<vmem>>, vector<1x10xf32>
    %30 = vector.broadcast %29 : vector<1x10xf32> to vector<128x10xf32>
    %31 = arith.addf %28, %30 : vector<128x10xf32>
    %cst_22 = arith.constant 0.000000e+00 : f32
    %32 = vector.broadcast %cst_22 : f32 to vector<128x10xf32>
    %33 = arith.maximumf %31, %32 : vector<128x10xf32>
    %c0_23 = arith.constant 0 : index
    %c0_24 = arith.constant 0 : index
    %34 = vector.load %arg10[%c0_23, %c0_24] : memref<1x128xf32, #tpu.memory_space<vmem>>, vector<1x128xf32>
    %cst_25 = arith.constant dense<0.000000e+00> : vector<1x128xf32>
    %35 = tpu.matmul %34, %16, %cst_25 {dimension_numbers = #tpu.dot_dimension_numbers<[1], [1], [0], [0], [0, 0, 1, 0], [], []>} : vector<1x128xf32>, vector<128x128xf32>, vector<1x128xf32> -> vector<1x128xf32>
    %c0_26 = arith.constant 0 : index
    %c0_27 = arith.constant 0 : index
    %36 = vector.load %arg11[%c0_26, %c0_27] : memref<1x10xf32, #tpu.memory_space<vmem>>, vector<1x10xf32>
    %cst_28 = arith.constant dense<0.000000e+00> : vector<1x128xf32>
    %37 = tpu.matmul %36, %33, %cst_28 {dimension_numbers = #tpu.dot_dimension_numbers<[1], [1], [0], [0], [0, 0, 1, 0], [], []>} : vector<1x10xf32>, vector<128x10xf32>, vector<1x128xf32> -> vector<1x128xf32>
    %38 = arith.addf %35, %37 : vector<1x128xf32>
    %c0_29 = arith.constant 0 : index
    %c0_30 = arith.constant 0 : index
    %39 = vector.load %arg12[%c0_29, %c0_30] : memref<1x1xf32, #tpu.memory_space<vmem>>, vector<1x1xf32>
    %40 = vector.broadcast %39 : vector<1x1xf32> to vector<1x128xf32>
    %41 = arith.addf %38, %40 : vector<1x128xf32>
    %cst_31 = arith.constant 0.000000e+00 : f32
    %42 = vector.broadcast %cst_31 : f32 to vector<1x128xf32>
    %43 = arith.subf %42, %41 : vector<1x128xf32>
    %44 = math.exp %43 : vector<1x128xf32>
    %cst_32 = arith.constant 1.000000e+00 : f32
    %45 = vector.broadcast %cst_32 : f32 to vector<1x128xf32>
    %46 = arith.addf %45, %44 : vector<1x128xf32>
    %cst_33 = arith.constant 1.000000e+00 : f32
    %47 = vector.broadcast %cst_33 : f32 to vector<1x128xf32>
    %48 = arith.divf %47, %46 : vector<1x128xf32>
    %c0_34 = arith.constant 0 : index
    %c0_35 = arith.constant 0 : index
    %49 = vector.load %arg13[%c0_34, %c0_35] : memref<1x128xf32, #tpu.memory_space<vmem>>, vector<1x128xf32>
    tpu.vector_store %arg13[%c0_34, %c0_35], %48 {strides = array<i32>} : memref<1x128xf32, #tpu.memory_space<vmem>>, vector<1x128xf32>,
    return
  }
  func.func @transform_0(%arg0: i32) -> (i32, i32) {
    %c0_i32 = arith.constant 0 : i32
    %c0_i32_0 = arith.constant 0 : i32
    return %arg0, %c0_i32 : i32, i32
  }
  func.func @transform_1(%arg0: i32) -> (i32, i32) {
    %c0_i32 = arith.constant 0 : i32
    %c0_i32_0 = arith.constant 0 : i32
    return %arg0, %c0_i32 : i32, i32
  }
  func.func @transform_2(%arg0: i32) -> (i32, i32) {
    %c0_i32 = arith.constant 0 : i32
    %c0_i32_0 = arith.constant 0 : i32
    %c0_i32_1 = arith.constant 0 : i32
    return %c0_i32, %c0_i32_0 : i32, i32
  }
  func.func @transform_3(%arg0: i32) -> (i32, i32) {
    %c0_i32 = arith.constant 0 : i32
    %c0_i32_0 = arith.constant 0 : i32
    %c0_i32_1 = arith.constant 0 : i32
    return %c0_i32, %c0_i32_0 : i32, i32
  }
  func.func @transform_4(%arg0: i32) -> (i32, i32) {
    %c0_i32 = arith.constant 0 : i32
    %c0_i32_0 = arith.constant 0 : i32
    %c0_i32_1 = arith.constant 0 : i32
    return %c0_i32, %c0_i32_0 : i32, i32
  }
  func.func @transform_5(%arg0: i32) -> (i32, i32) {
    %c0_i32 = arith.constant 0 : i32
    %c0_i32_0 = arith.constant 0 : i32
    %c0_i32_1 = arith.constant 0 : i32
    return %c0_i32, %c0_i32_0 : i32, i32
  }
  func.func @transform_6(%arg0: i32) -> (i32, i32) {
    %c0_i32 = arith.constant 0 : i32
    %c0_i32_0 = arith.constant 0 : i32
    %c0_i32_1 = arith.constant 0 : i32
    return %c0_i32, %c0_i32_0 : i32, i32
  }
  func.func @transform_7(%arg0: i32) -> (i32, i32) {
    %c0_i32 = arith.constant 0 : i32
    %c0_i32_0 = arith.constant 0 : i32
    %c0_i32_1 = arith.constant 0 : i32
    return %c0_i32, %c0_i32_0 : i32, i32
  }
  func.func @transform_8(%arg0: i32) -> (i32, i32) {
    %c0_i32 = arith.constant 0 : i32
    %c0_i32_0 = arith.constant 0 : i32
    %c0_i32_1 = arith.constant 0 : i32
    return %c0_i32, %c0_i32_0 : i32, i32
  }
  func.func @transform_9(%arg0: i32) -> (i32, i32) {
    %c0_i32 = arith.constant 0 : i32
    %c0_i32_0 = arith.constant 0 : i32
    %c0_i32_1 = arith.constant 0 : i32
    return %c0_i32, %c0_i32_0 : i32, i32
  }
  func.func @transform_10(%arg0: i32) -> (i32, i32) {
    %c0_i32 = arith.constant 0 : i32
    %c0_i32_0 = arith.constant 0 : i32
    %c0_i32_1 = arith.constant 0 : i32
    return %c0_i32, %c0_i32_0 : i32, i32
  }
  func.func @transform_11(%arg0: i32) -> (i32, i32) {
    %c0_i32 = arith.constant 0 : i32
    %c0_i32_0 = arith.constant 0 : i32
    %c0_i32_1 = arith.constant 0 : i32
    return %c0_i32, %c0_i32_0 : i32, i32
  }
  func.func @transform_12(%arg0: i32) -> (i32, i32) {
    %c0_i32 = arith.constant 0 : i32
    %c0_i32_0 = arith.constant 0 : i32
    return %c0_i32, %arg0 : i32, i32
  }
}

</mosaic_0001>

<bundles_post_ra>
// kernel: tpu_custom_call.1
= control target key start
LH: loop header
LB: loop body
LE: loop exit
PB: predicated region body
PF: predicated region fallthrough
CT: control target
= control target key end

     0   :  { %s2307_s0 = inlined_call_operand.vmem [shape: s32[256,1], index: 0, kind: input, shape index: {}]   ;;  %s2308_s1 = inlined_call_operand.vmem [shape: s32[256,1], index: 1, kind: input, shape index: {}]   ;;  %s2309_s2 = inlined_call_operand.vmem [shape: f32[64,128], index: 2, kind: input, shape index: {}]   ;;  %s2310_s3 = inlined_call_operand.vmem [shape: f32[96,128], index: 3, kind: input, shape index: {}]   ;;  %s2311_s4 = inlined_call_operand.vmem [shape: f32[128,20], index: 4, kind: input, shape index: {}]   ;;  %s2312_s5 = inlined_call_operand.vmem [shape: f32[128,20], index: 5, kind: input, shape index: {}]   ;;  %s2313_s6 = inlined_call_operand.vmem [shape: f32[1,20], index: 6, kind: input, shape index: {}]   ;;  %s2314_s7 = inlined_call_operand.vmem [shape: f32[20,10], index: 7, kind: input, shape index: {}]   ;;  %s2315_s8 = inlined_call_operand.vmem [shape: f32[1,10], index: 8, kind: input, shape index: {}]   ;;  %s2316_s9 = inlined_call_operand.vmem [shape: f32[1,128], index: 9, kind: input, shape index: {}]   ;;  %s2317_s10 = inlined_call_operand.vmem [shape: f32[1,10], index: 10, kind: input, shape index: {}]   ;;  %s2318_s11 = inlined_call_operand.<no memory space> [shape: f32[1,1], index: 11, kind: input, shape index: {}]   ;;  %s2319_s12 = inlined_call_operand.hbm [shape: f32[1,256], index: 12, kind: output, shape index: {}]  }
   0x1   :  { %2320 = sst [smem:[#allocation6_spill]] %s2307_s0  ;;  %v17_v0 = vstv %s2318_s11 }
   0x2   :  { %18 = vst [vmem:[#allocation2] sm:$0x1] %v17_v0 }
   0x3   :  { %19 = vsyncpa [#allocation4], 0 }
   0x4   :  { %21 = vsyncpa [#allocation4 + $0x1], 0  ;;  %s1776_s23 = smov 0   ;;  %s1778_s24 = smov 0  }
   0x5   :  { %s1780_s25 = smov 0   ;;  %s1782_s26 = smov 0  }
   0x6 LB: > { %s1797_s11 = sadd.s32 4294967295, %s1704_s26   ;;  %s1468_s27 = sadd.s32 4294967294, %s1704_s26   ;;  %s1704_s26 = sphi %s1782_s26, %s2327_s26   ;;  %s1700_s25 = sphi %s1780_s25, %s2326_s25   ;;  %s1696_s24 = sphi %s1778_s24, %s2325_s24   ;;  %s1692_s23 = sphi %s1776_s23, %s2324_s23  }
   0x7   : > { %s1801_s28 = sadd.s32 1, %s1704_s26   ;;  %s296_s29 = sadd.s32 1, %s1700_s25 }
   0x8   : > { %s293_s30 = ssub.s32 %s1704_s26, %s1801_s28  ;;  %p306_p0 = scmp.ne.s32.totalorder %s1700_s25, %s1696_s24 }
   0x9   : > { %p294_p1 = scmp.eq.s32.totalorder %s293_s30, 0  ;;  %p307_p2 = scmp.eq.s32.totalorder %s1797_s11, 1 }
   0xa   : > { %p312_p3 = scmp.ne.s32.totalorder %s1696_s24, %s1692_s23  ;;  %p313_p4 = scmp.eq.s32.totalorder %s1468_s27, 1 }
   0xb   : > { %s1812_s13 = scalar_select %p294_p1, %s1700_s25, %s296_s29  }
   0xc   : > { %p1814_p5 = por %p307_p2, %p306_p0  ;;  %p1818_p6 = por %p313_p4, %p312_p3 }
   0xd   : > { %p1471_p7 = scmp.ge.s32.totalorder %s1704_s26, 1  ;;  %p379_p8 = scmp.lt.s32.totalorder %s1704_s26, 3 }
   0xf   : > { %p380_p9 = pnand %p1471_p7, %p379_p8 }
  0x10   : > { %s1472_s16 = sshll.u32 (!%p380_p9), %s1797_s11, 4  ;;  %s2323_s0 = sld [smem:[#allocation6_spill]] (!%p380_p9) }
  0x11   : > { %383 = sbr.rel (%p380_p9) target bundleno = 915 (0x393), region = 68  ;;  %p426_p10 = scmp.lt.s32.totalorder (!%p380_p9), %s1472_s16, 31 }
  0x12   : > { %s423_s29 = sand.u32 (!%p380_p9), 1, %s1696_s24  }
  0x13   : > { %s424_s18 = scalar_lea.vmem (!%p380_p9), [#allocation3], %s423_s29 }
  0x14   : > { %s1399_s19 = sshll.u32 (!%p380_p9), %s424_s18, 4  ;;  %s1400_s19 = int_to_ptr.vmem [resolvable:$true] %s1399_s19 }
  0x16   : > { %v1706_v1 = vmov 0   ;;  %s2329_s16 = smov (!%p426_p10, %s1472_s16), 31  ;;  %v670_v31 = vld [vmem:[%s2309_s2 + $0x38] sm:$0xff]  ;;  %v669_v33 = vld [vmem:[%s2309_s2 + $0x30] sm:$0xff]  ;;  %v668_v34 = vld [vmem:[%s2309_s2 + $0x28] sm:$0xff]  ;;  %v437_v43 = vlaneseq  ;;  %v1707_v46 = vmov 0.0  }
  0x17   : > { %1635 = vset.pattern.permute.xlu2 %v1706_v1  ;;  %1634 = vset.pattern.permute.xlu1 %v1706_v1  ;;  %s1473_s17 = sshll.u32 %s2329_s16, 3  ;;  %v667_v35 = vld [vmem:[%s2309_s2 + $0x20] sm:$0xff]  ;;  %v666_v38 = vld [vmem:[%s2309_s2 + $0x18] sm:$0xff]  ;;  %v665_v40 = vld [vmem:[%s2309_s2 + $0x10] sm:$0xff]  ;;  %vm671_vm1 = vcmask 523264   ;;  %vm797_vm11 = vcmask 785408  }
  0x18   : > { %1633 = vset.pattern.permute.xlu0 %v1706_v1  ;;  %s1828_s20 = scalar_lea.vmem %s2323_s0, %s1473_s17  ;;  %s1836_s27 = scalar_lea.vmem %s2308_s1, %s1473_s17  ;;  %1576 = vmatpush.msra.mxu1 %v670_v31  ;;  %v1360_v39 = vld [vmem:[#allocation2] sm:$0x1]  ;;  %v664_v41 = vld [vmem:[%s2309_s2 + $0x8] sm:$0xff]  ;;  %v1891_v44 = vand.u32 127, %v437_v43  ;;  %v796_v48 = vld [vmem:[%s2310_s3 + $0x58] sm:$0xff] }
  0x19   : > { %v447_v2 = vld [vmem:[%s1828_s20 + $0x40] sm:$0xff]  ;;  %v445_v3 = vld [vmem:[%s1828_s20 + $0x30] sm:$0xff]  ;;  %v448_v5 = vld [vmem:[%s1828_s20 + $0x48] sm:$0xff]  ;;  %728 = vmatpush.msra.mxu0 %v670_v31  ;;  %1577 = vmatpush.msra.mxu3 %v670_v31  ;;  %s1397_s17 = scalar_lea.hbm %s2319_s12, %s1797_s11  ;;  %s1662_s16 = scalar_lea.hbm %s2319_s12, 2 }
  0x1a   : > { %v439_v4 = vld [vmem:[%s1828_s20] sm:$0xff]  ;;  %480 = vperm.xlu1 %1634, %v447_v2   ;;  %474 = vperm.xlu0 %1633, %v445_v3   ;;  %v446_v6 = vld [vmem:[%s1828_s20 + $0x38] sm:$0xff]  ;;  %v552_v8 = vld [vmem:[%s1836_s27 + $0x8] sm:$0xff] }
  0x1b   : > { %456 = vperm.xlu2 %1635, %v439_v4   ;;  %v551_v7 = vld [vmem:[%s1836_s27] sm:$0xff]  ;;  %v440_v9 = vld [vmem:[%s1828_s20 + $0x8] sm:$0xff]  ;;  %v441_v10 = vld [vmem:[%s1828_s20 + $0x10] sm:$0xff]  ;;  %1578 = vmatpush.msra.mxu1 %v669_v33 }
  0x1c   : > { %v442_v11 = vld [vmem:[%s1828_s20 + $0x18] sm:$0xff]  ;;  %v553_v12 = vld [vmem:[%s1836_s27 + $0x10] sm:$0xff]  ;;  %v555_v14 = vld [vmem:[%s1836_s27 + $0x20] sm:$0xff]  ;;  %729 = vmatpush.msra.mxu0 %v669_v33  ;;  %1579 = vmatpush.msra.mxu3 %v669_v33 }
  0x1d   : > { %v554_v13 = vld [vmem:[%s1836_s27 + $0x18] sm:$0xff]  ;;  %v443_v15 = vld [vmem:[%s1828_s20 + $0x20] sm:$0xff]  ;;  %v444_v16 = vld [vmem:[%s1828_s20 + $0x28] sm:$0xff]  ;;  %1580 = vmatpush.msra.mxu1 %v668_v34 }
  0x1e   : > { %v557_v17 = vld [vmem:[%s1836_s27 + $0x30] sm:$0xff]  ;;  %v556_v18 = vld [vmem:[%s1836_s27 + $0x28] sm:$0xff]  ;;  %v558_v19 = vld [vmem:[%s1836_s27 + $0x38] sm:$0xff]  ;;  %730 = vmatpush.msra.mxu0 %v668_v34  ;;  %1581 = vmatpush.msra.mxu3 %v668_v34 }
  0x1f   : > { %v560_v20 = vld [vmem:[%s1836_s27 + $0x48] sm:$0xff]  ;;  %v559_v21 = vld [vmem:[%s1836_s27 + $0x40] sm:$0xff]  ;;  %v449_v22 = vld [vmem:[%s1828_s20 + $0x50] sm:$0xff]  ;;  %1582 = vmatpush.msra.mxu1 %v667_v35 }
  0x20   : > { %v450_v23 = vld [vmem:[%s1828_s20 + $0x58] sm:$0xff]  ;;  %v561_v24 = vld [vmem:[%s1836_s27 + $0x50] sm:$0xff]  ;;  %v563_v26 = vld [vmem:[%s1836_s27 + $0x60] sm:$0xff]  ;;  %731 = vmatpush.msra.mxu0 %v667_v35  ;;  %1583 = vmatpush.msra.mxu3 %v667_v35 }
  0x21   : > { %v562_v25 = vld [vmem:[%s1836_s27 + $0x58] sm:$0xff]  ;;  %v451_v27 = vld [vmem:[%s1828_s20 + $0x60] sm:$0xff]  ;;  %v452_v28 = vld [vmem:[%s1828_s20 + $0x68] sm:$0xff]  ;;  %1584 = vmatpush.msra.mxu1 %v666_v38 }
  0x22   : > { %483 = vperm.xlu1 %1634, %v448_v5   ;;  %477 = vperm.xlu0 %1633, %v446_v6   ;;  %v453_v29 = vld [vmem:[%s1828_s20 + $0x70] sm:$0xff]  ;;  %v564_v30 = vld [vmem:[%s1836_s27 + $0x68] sm:$0xff]  ;;  %v566_v36 = vld [vmem:[%s1836_s27 + $0x78] sm:$0xff] }
  0x23   : > { %568 = vperm.xlu2 %1635, %v551_v7   ;;  %v565_v32 = vld [vmem:[%s1836_s27 + $0x70] sm:$0xff]  ;;  %v454_v37 = vld [vmem:[%s1828_s20 + $0x78] sm:$0xff]  ;;  %1586 = vmatpush.msra.mxu1 %v665_v40  ;;  %v663_v42 = vld [vmem:[%s2309_s2] sm:$0xff]  ;;  %s1401_s20 = sshll.u32 %s1397_s17, 4  ;;  %s1389_s27 = scalar_lea.sflag [#allocation4], %s423_s29  ;;  %s1402_s20 = int_to_ptr.hbm [resolvable:$true] %s1401_s20 }
  0x24   : > { %732 = vmatpush.msra.mxu0 %v666_v38  ;;  %1585 = vmatpush.msra.mxu3 %v666_v38  ;;  %v795_v49 = vld [vmem:[%s2310_s3 + $0x50] sm:$0xff]  ;;  %v794_v50 = vld [vmem:[%s2310_s3 + $0x48] sm:$0xff]  ;;  %v793_v52 = vld [vmem:[%s2310_s3 + $0x40] sm:$0xff]  ;;  %s1656_s11 = sshra.s32 %s1402_s20, 4  ;;  %s1657_s11 = int_to_ptr.hbm [resolvable:$true] %s1656_s11 }
  0x25   : > { %1588 = vmatpush.msra.mxu1 %v664_v41  ;;  %v792_v53 = vld [vmem:[%s2310_s3 + $0x38] sm:$0xff]  ;;  %v791_v54 = vld [vmem:[%s2310_s3 + $0x30] sm:$0xff]  ;;  %v790_v55 = vld [vmem:[%s2310_s3 + $0x28] sm:$0xff]  ;;  %s1658_s21 = scalar_lea.hbm %s1657_s11, 1  ;;  %p1663_p0 = scmp.lt.s32.totalorder %s1657_s11, %s2319_s12 }
  0x26   : > { %733 = vmatpush.msra.mxu0 %v665_v40  ;;  %1587 = vmatpush.msra.mxu3 %v665_v40  ;;  %v789_v57 = vld [vmem:[%s2310_s3 + $0x20] sm:$0xff]  ;;  %v788_v58 = vld [vmem:[%s2310_s3 + $0x18] sm:$0xff]  ;;  %v787_v59 = vld [vmem:[%s2310_s3 + $0x10] sm:$0xff]  ;;  %p1659_p11 = scmp.ne.s32.totalorder %s1657_s11, %s1658_s21  ;;  %p1664_p1 = scmp.lt.s32.totalorder %s1662_s16, %s1658_s21 }
  0x27   : > { %1590 = vmatpush.msra.mxu1 %v663_v42  ;;  %v786_v60 = vld [vmem:[%s2310_s3 + $0x8] sm:$0xff]  ;;  %v785_v1 = vld [vmem:[%s2310_s3] sm:$0xff]  ;;  %v942_v38 = vld [vmem:[%s2311_s4 + $0x78] sm:$0xff] }
  0x28   : > { %734 = vmatpush.msra.mxu0 %v664_v41  ;;  %1589 = vmatpush.msra.mxu3 %v664_v41  ;;  %v941_v43 = vld [vmem:[%s2311_s4 + $0x70] sm:$0xff]  ;;  %p1660_p12 = pnand %p1659_p11, %p1814_p5  ;;  %p1665_p2 = por %p1664_p1, %p1663_p0 }
  0x29   : > { %850 = vmatpush.msrb.mxu1 %v796_v48  ;;  %v939_v48 = vld [vmem:[%s2311_s4 + $0x60] sm:$0xff] }
  0x2a   : > { %571 = vperm.xlu1 %1634, %v552_v8   ;;  %459 = vperm.xlu0 %1633, %v440_v9   ;;  %p1661_p13 = pneg %p1660_p12 }
  0x2b   : > { %462 = vperm.xlu2 %1635, %v441_v10   ;;  %735 = vmatpush.msra.mxu0 %v663_v42 }
  0x2c   : > { %1591 = vmatpush.msra.mxu3 %v663_v42  ;;  %851 = vmatpush.msrb.mxu1 %v795_v49  ;;  %v938_v49 = vld [vmem:[%s2311_s4 + $0x58] sm:$0xff]  ;;  %p1666_p3 = pnand %p1665_p2, %p1661_p13 }
  0x2e   : > { %852 = vmatpush.msrb.mxu1 %v794_v50  ;;  %1024 = vmatpush.msrb.mxu3 %v942_v38 }
  0x30   : > { %853 = vmatpush.msrb.mxu1 %v793_v52  ;;  %1025 = vmatpush.msrb.mxu3 %v941_v43  ;;  %v937_v52 = vld [vmem:[%s2311_s4 + $0x50] sm:$0xff] }
  0x32   : > { %465 = vperm.xlu1 %1634, %v442_v11   ;;  %574 = vperm.xlu0 %1633, %v553_v12  }
  0x33   : > { %577 = vperm.xlu2 %1635, %v554_v13   ;;  %854 = vmatpush.msrb.mxu1 %v792_v53  ;;  %v936_v53 = vld [vmem:[%s2311_s4 + $0x48] sm:$0xff] }
  0x35   : > { %855 = vmatpush.msrb.mxu1 %v791_v54 }
  0x37   : > { %856 = vmatpush.msrb.mxu1 %v790_v55  ;;  %v935_v55 = vld [vmem:[%s2311_s4 + $0x40] sm:$0xff] }
  0x39   : > { %857 = vmatpush.msrb.mxu1 %v789_v57 }
  0x3a   : > { %580 = vperm.xlu1 %1634, %v555_v14   ;;  %468 = vperm.xlu0 %1633, %v443_v15  }
  0x3b   : > { %471 = vperm.xlu2 %1635, %v444_v16   ;;  %858 = vmatpush.msrb.mxu1 %v788_v58 }
  0x3d   : > { %859 = vmatpush.msrb.mxu1 %v787_v59  ;;  %v933_v59 = vld [vmem:[%s2311_s4 + $0x30] sm:$0xff] }
  0x3f   : > { %860 = vmatpush.msrb.mxu1 %v786_v60  ;;  %v932_v60 = vld [vmem:[%s2311_s4 + $0x28] sm:$0xff] }
  0x41   : > { %861 = vmatpush.msrb.mxu1 %v785_v1  ;;  %v957_v1 = vld [vmem:[%s2312_s5 + $0x70] sm:$0xff] }
  0x42   : > { %586 = vperm.xlu1 %1634, %v557_v17   ;;  %583 = vperm.xlu0 %1633, %v556_v18  }
  0x43   : > { %589 = vperm.xlu2 %1635, %v558_v19  }
  0x4a   : > { %595 = vperm.xlu1 %1634, %v560_v20   ;;  %592 = vperm.xlu0 %1633, %v559_v21  }
  0x4b   : > { %486 = vperm.xlu2 %1635, %v449_v22  }
  0x52   : > { %489 = vperm.xlu1 %1634, %v450_v23   ;;  %598 = vperm.xlu0 %1633, %v561_v24  }
  0x53   : > { %601 = vperm.xlu2 %1635, %v562_v25  }
  0x5a   : > { %604 = vperm.xlu1 %1634, %v563_v26   ;;  %492 = vperm.xlu0 %1633, %v451_v27  }
  0x5b   : > { %495 = vperm.xlu2 %1635, %v452_v28  }
  0x62   : > { %498 = vperm.xlu1 %1634, %v453_v29   ;;  %607 = vperm.xlu0 %1633, %v564_v30  }
  0x63   : > { %610 = vperm.xlu2 %1635, %v565_v32  }
  0x6a   : > { %613 = vperm.xlu1 %1634, %v566_v36   ;;  %501 = vperm.xlu0 %1633, %v454_v37  }
  0x6b   : > { %1363 = vperm.xlu2 %1635, %v1360_v39  }
  0x75   : > { %v457_v45 = vpop.permute.xlu2 %456 }
  0x76   : > { %vm503_vm0 = vcmp.eq.s32.totalorder %v1891_v44, %v457_v45  ;;  %v940_v45 = vld [vmem:[%s2311_s4 + $0x68] sm:$0xff] }
  0x77   : > { %v1476_v47 = vsel %vm503_vm0, 1.0, %v1707_v46  ;;  %1026 = vmatpush.msrb.mxu3 %v940_v45 }
  0x78   : > { %1508 = vmatmul.msk.f32.vlgmr.msra.gmra.mxu0 %vm671_vm1, %v1476_v47 }
  0x79   : > { %1027 = vmatpush.msrb.mxu3 %v939_v48 }
  0x7b   : > { %1028 = vmatpush.msrb.mxu3 %v938_v49 }
  0x7d   : > { %v569_v51 = vpop.permute.xlu2 %568  ;;  %1029 = vmatpush.msrb.mxu3 %v937_v52 }
  0x7e   : > { %vm615_vm9 = vcmp.eq.s32.totalorder %v1891_v44, %v569_v51 }
  0x7f   : > { %v1492_v19 = vsel %vm615_vm9, 1.0, %v1707_v46  ;;  %1030 = vmatpush.msrb.mxu3 %v936_v53 }
  0x81   : > { %1031 = vmatpush.msrb.mxu3 %v935_v55 }
  0x85   : > { %v463_v56 = vpop.permute.xlu2 %462 }
  0x86   : > { %vm505_vm6 = vcmp.eq.s32.totalorder %v1891_v44, %v463_v56  ;;  %v934_v56 = vld [vmem:[%s2311_s4 + $0x38] sm:$0xff] }
  0x87   : > { %v1478_v11 = vsel %vm505_vm6, 1.0, %v1707_v46  ;;  %1032 = vmatpush.msrb.mxu3 %v934_v56 }
  0x89   : > { %1033 = vmatpush.msrb.mxu3 %v933_v59 }
  0x8b   : > { %1034 = vmatpush.msrb.mxu3 %v932_v60 }
  0x8c   : > { %v481_v61 = vpop.permute.xlu1 %480  ;;  %v475_v62 = vpop.permute.xlu0 %474 }
  0x8d   : > { %vm509_vm2 = vcmp.eq.s32.totalorder %v1891_v44, %v475_v62  ;;  %v1930_v63 = vpop.permute.xlu2 %577  ;;  %vm511_vm4 = vcmp.eq.s32.totalorder %v1891_v44, %v481_v61  ;;  %v931_v61 = vld [vmem:[%s2311_s4 + $0x20] sm:$0xff]  ;;  %v958_v62 = vld [vmem:[%s2312_s5 + $0x78] sm:$0xff] }
  0x8e   : > { %v1482_v0 = vsel %vm509_vm2, 1.0, %v1707_v46  ;;  %v1484_v6 = vsel %vm511_vm4, 1.0, %v1707_v46  ;;  %vm618_vm0 = vcmp.eq.s32.totalorder %v1891_v44, %v1930_v63  ;;  %v930_v63 = vld [vmem:[%s2311_s4 + $0x18] sm:$0xff]  ;;  %1035 = vmatpush.msrb.mxu3 %v931_v61  ;;  %959 = vmatpush.msra.mxu2 %v958_v62  ;;  %v1127_v62 = vld [vmem:[%s2314_s7 + $0x10] sm:$0xf] }
  0x8f   : > { %1514 = vmatmul.msk.f32.vlgmr.msra.gmra.mxu1 %vm671_vm1, %v1482_v0  ;;  %v1495_v31 = vsel %vm618_vm0, 1.0, %v1707_v46 }
  0x90   : > { %1036 = vmatpush.msrb.mxu3 %v930_v63  ;;  %960 = vmatpush.msra.mxu2 %v957_v1  ;;  %v1125_v1 = vld [vmem:[%s2314_s7] sm:$0xff] }
  0x94   : > { %v484_v2 = vpop.permute.xlu1 %483  ;;  %v478_v3 = vpop.permute.xlu0 %477 }
  0x95   : > { %vm510_vm3 = vcmp.eq.s32.totalorder %v1891_v44, %v478_v3  ;;  %v472_v4 = vpop.permute.xlu2 %471  ;;  %vm512_vm7 = vcmp.eq.s32.totalorder %v1891_v44, %v484_v2  ;;  %v929_v2 = vld [vmem:[%s2311_s4 + $0x10] sm:$0xff]  ;;  %v956_v3 = vld [vmem:[%s2312_s5 + $0x68] sm:$0xff] }
  0x96   : > { %v1483_v5 = vsel %vm510_vm3, 1.0, %v1707_v46  ;;  %v1485_v15 = vsel %vm512_vm7, 1.0, %v1707_v46  ;;  %vm508_vm14 = vcmp.eq.s32.totalorder %v1891_v44, %v472_v4  ;;  %v928_v4 = vld [vmem:[%s2311_s4 + $0x8] sm:$0xff]  ;;  %1037 = vmatpush.msrb.mxu3 %v929_v2  ;;  %961 = vmatpush.msra.mxu2 %v956_v3 }
  0x97   : > { %1515 = vmatmul.msk.f32.gmra.mxu1 %vm671_vm1, %v1483_v5  ;;  %v1481_v27 = vsel %vm508_vm14, 1.0, %v1707_v46  ;;  %v955_v5 = vld [vmem:[%s2312_s5 + $0x60] sm:$0xff] }
  0x98   : > { %1038 = vmatpush.msrb.mxu3 %v928_v4  ;;  %962 = vmatpush.msra.mxu2 %v955_v5 }
  0x9c   : > { %v572_v7 = vpop.permute.xlu1 %571  ;;  %v460_v8 = vpop.permute.xlu0 %459 }
  0x9d   : > { %vm504_vm5 = vcmp.eq.s32.totalorder %v1891_v44, %v460_v8  ;;  %v1943_v9 = vpop.permute.xlu2 %589  ;;  %vm616_vm12 = vcmp.eq.s32.totalorder %v1891_v44, %v572_v7  ;;  %v954_v7 = vld [vmem:[%s2312_s5 + $0x58] sm:$0xff] }
  0x9e   : > { %v1477_v10 = vsel %vm504_vm5, 1.0, %v1707_v46  ;;  %v1493_v23 = vsel %vm616_vm12, 1.0, %v1707_v46  ;;  %vm622_vm9 = vcmp.eq.s32.totalorder %v1891_v44, %v1943_v9  ;;  %963 = vmatpush.msra.mxu2 %v954_v7 }
  0x9f   : > { %1509 = vmatmul.msk.f32.gmra.mxu0 %vm671_vm1, %v1477_v10  ;;  %1516 = vmatmul.msk.f32.gmra.mxu1 %vm671_vm1, %v1484_v6  ;;  %v1499_v57 = vsel %vm622_vm9, 1.0, %v1707_v46  ;;  %v927_v6 = vld [vmem:[%s2311_s4] sm:$0xff]  ;;  %v953_v10 = vld [vmem:[%s2312_s5 + $0x50] sm:$0xff] }
  0xa0   : > { %1039 = vmatpush.msrb.mxu3 %v927_v6  ;;  %964 = vmatpush.msra.mxu2 %v953_v10  ;;  %v2197_v10 = vld [vmem:[%s2313_s6] ss:$0 sm:$0xff] }
  0xa4   : > { %v466_v12 = vpop.permute.xlu1 %465  ;;  %v575_v13 = vpop.permute.xlu0 %574 }
  0xa5   : > { %v487_v14 = vpop.permute.xlu2 %486  ;;  %vm506_vm10 = vcmp.eq.s32.totalorder %v1891_v44, %v466_v12  ;;  %vm617_vm15 = vcmp.eq.s32.totalorder %v1891_v44, %v575_v13  ;;  %v951_v12 = vld [vmem:[%s2312_s5 + $0x40] sm:$0xff]  ;;  %v950_v13 = vld [vmem:[%s2312_s5 + $0x38] sm:$0xff] }
  0xa6   : > { %vm513_vm8 = vcmp.eq.s32.totalorder %v1891_v44, %v487_v14  ;;  %v1479_v20 = vsel %vm506_vm10, 1.0, %v1707_v46  ;;  %v1494_v28 = vsel %vm617_vm15, 1.0, %v1707_v46 }
  0xa7   : > { %v1486_v16 = vsel %vm513_vm8, 1.0, %v1707_v46  ;;  %1510 = vmatmul.msk.f32.gmra.mxu0 %vm671_vm1, %v1478_v11  ;;  %1517 = vmatmul.msk.f32.gmra.mxu1 %vm671_vm1, %v1485_v15  ;;  %v952_v11 = vld [vmem:[%s2312_s5 + $0x48] sm:$0xff]  ;;  %v949_v15 = vld [vmem:[%s2312_s5 + $0x30] sm:$0xff] }
  0xa8   : > { %1518 = vmatmul.msk.f32.vlgmr.msra.gmra.mxu3 %vm671_vm1, %v1486_v16  ;;  %965 = vmatpush.msra.mxu2 %v952_v11  ;;  %v948_v16 = vld [vmem:[%s2312_s5 + $0x28] sm:$0xff] }
  0xaa   : > { %966 = vmatpush.msra.mxu2 %v951_v12 }
  0xac   : > { %v581_v17 = vpop.permute.xlu1 %580  ;;  %v469_v18 = vpop.permute.xlu0 %468  ;;  %967 = vmatpush.msra.mxu2 %v950_v13 }
  0xad   : > { %vm507_vm13 = vcmp.eq.s32.totalorder %v1891_v44, %v469_v18  ;;  %v1985_v32 = vpop.permute.xlu2 %601  ;;  %vm619_vm3 = vcmp.eq.s32.totalorder %v1891_v44, %v581_v17  ;;  %v947_v17 = vld [vmem:[%s2312_s5 + $0x20] sm:$0xff]  ;;  %v946_v18 = vld [vmem:[%s2312_s5 + $0x18] sm:$0xff] }
  0xae   : > { %v1480_v24 = vsel %vm507_vm13, 1.0, %v1707_v46  ;;  %v1496_v35 = vsel %vm619_vm3, 1.0, %v1707_v46  ;;  %968 = vmatpush.msra.mxu2 %v949_v15  ;;  %vm626_vm14 = vcmp.eq.s32.totalorder %v1891_v44, %v1985_v32 }
  0xaf   : > { %1511 = vmatmul.msk.f32.gmra.mxu0 %vm671_vm1, %v1479_v20  ;;  %1524 = vmatmul.msk.f32.vlgmr.msrb.gmra.mxu1 %vm797_vm11, %v1492_v19  ;;  %v1503_v19 = vsel %vm626_vm14, 1.0, %v1707_v46  ;;  %v945_v20 = vld [vmem:[%s2312_s5 + $0x10] sm:$0xff] }
  0xb0   : > { %969 = vmatpush.msra.mxu2 %v948_v16 }
  0xb2   : > { %970 = vmatpush.msra.mxu2 %v947_v17 }
  0xb4   : > { %v587_v21 = vpop.permute.xlu1 %586  ;;  %v584_v22 = vpop.permute.xlu0 %583  ;;  %971 = vmatpush.msra.mxu2 %v946_v18 }
  0xb5   : > { %v496_v39 = vpop.permute.xlu2 %495  ;;  %vm620_vm5 = vcmp.eq.s32.totalorder %v1891_v44, %v584_v22  ;;  %vm621_vm7 = vcmp.eq.s32.totalorder %v1891_v44, %v587_v21  ;;  %v944_v21 = vld [vmem:[%s2312_s5 + $0x8] sm:$0xff] }
  0xb6   : > { %vm516_vm6 = vcmp.eq.s32.totalorder %v1891_v44, %v496_v39  ;;  %v1497_v40 = vsel %vm620_vm5, 1.0, %v1707_v46  ;;  %v1498_v50 = vsel %vm621_vm7, 1.0, %v1707_v46  ;;  %972 = vmatpush.msra.mxu2 %v945_v20  ;;  %vm1268_vm5 = vcmask 80896  }
  0xb7   : > { %1512 = vmatmul.msk.f32.gmra.mxu0 %vm671_vm1, %v1480_v24  ;;  %1525 = vmatmul.msk.f32.gmra.mxu1 %vm797_vm11, %v1493_v23  ;;  %v1489_v41 = vsel %vm516_vm6, 1.0, %v1707_v46  ;;  %v943_v23 = vld [vmem:[%s2312_s5] sm:$0xff] }
  0xb8   : > { %973 = vmatpush.msra.mxu2 %v944_v21 }
  0xba   : > { %974 = vmatpush.msra.mxu2 %v943_v23 }
  0xbc   : > { %v1971_v25 = vpop.permute.xlu1 %595  ;;  %v1973_v26 = vpop.permute.xlu0 %592 }
  0xbd   : > { %vm623_vm12 = vcmp.eq.s32.totalorder %v1891_v44, %v1973_v26 }
  0xbe   : > { %v1500_v0 = vsel %vm623_vm12, 1.0, %v1707_v46 }
  0xbf   : > { %1513 = vmatmul.msk.f32.gmra.mxu0 %vm671_vm1, %v1481_v27  ;;  %1526 = vmatmul.msk.f32.gmra.mxu1 %vm797_vm11, %v1494_v28  ;;  %v611_v27 = vpop.permute.xlu2 %610 }
  0xc4   : > { %v490_v29 = vpop.permute.xlu1 %489  ;;  %v1981_v30 = vpop.permute.xlu0 %598 }
  0xc5   : > { %vm514_vm2 = vcmp.eq.s32.totalorder %v1891_v44, %v490_v29  ;;  %vm625_vm13 = vcmp.eq.s32.totalorder %v1891_v44, %v1981_v30 }
  0xc6   : > { %v1487_v33 = vsel %vm514_vm2, 1.0, %v1707_v46  ;;  %v1502_v14 = vsel %vm625_vm13, 1.0, %v1707_v46  ;;  %vm629_vm2 = vcmp.eq.s32.totalorder %v1891_v44, %v611_v27 }
  0xc7   : > { %1519 = vmatmul.msk.f32.gmra.mxu3 %vm671_vm1, %v1487_v33  ;;  %1527 = vmatmul.msk.f32.gmra.mxu1 %vm797_vm11, %v1495_v31  ;;  %v1506_v30 = vsel %vm629_vm2, 1.0, %v1707_v46 }
  0xcc   : > { %v493_v34 = vpop.permute.xlu0 %492  ;;  %v1993_v36 = vpop.permute.xlu1 %604 }
  0xcd   : > { %vm515_vm4 = vcmp.eq.s32.totalorder %v1891_v44, %v493_v34  ;;  %vm627_vm15 = vcmp.eq.s32.totalorder %v1891_v44, %v1993_v36 }
  0xce   : > { %v1488_v37 = vsel %vm515_vm4, 1.0, %v1707_v46  ;;  %v1504_v24 = vsel %vm627_vm15, 1.0, %v1707_v46  ;;  %vm1132_vm4 = vcmask 162816  }
  0xcf   : > { %1520 = vmatmul.msk.f32.gmra.mxu3 %vm671_vm1, %v1488_v37  ;;  %1528 = vmatmul.msk.f32.gmra.mxu1 %vm797_vm11, %v1496_v35 }
  0xd4   : > { %v2005_v42 = vpop.permute.xlu0 %607  ;;  %v499_v47 = vpop.permute.xlu1 %498 }
  0xd5   : > { %vm517_vm8 = vcmp.eq.s32.totalorder %v1891_v44, %v499_v47  ;;  %vm628_vm0 = vcmp.eq.s32.totalorder %v1891_v44, %v2005_v42 }
  0xd6   : > { %v1490_v51 = vsel %vm517_vm8, 1.0, %v1707_v46  ;;  %v1505_v26 = vsel %vm628_vm0, 1.0, %v1707_v46 }
  0xd7   : > { %1521 = vmatmul.msk.f32.gmra.mxu3 %vm671_vm1, %v1489_v41  ;;  %1529 = vmatmul.msk.f32.gmra.mxu1 %vm797_vm11, %v1497_v40 }
  0xdc   : > { %v502_v54 = vpop.permute.xlu0 %501  ;;  %v614_v31 = vpop.permute.xlu1 %613 }
  0xdd   : > { %vm518_vm10 = vcmp.eq.s32.totalorder %v1891_v44, %v502_v54  ;;  %vm630_vm3 = vcmp.eq.s32.totalorder %v1891_v44, %v614_v31 }
  0xde   : > { %v1491_v58 = vsel %vm518_vm10, 1.0, %v1707_v46  ;;  %v1507_v34 = vsel %vm630_vm3, 1.0, %v1707_v46 }
  0xdf   : > { %1522 = vmatmul.msk.f32.gmra.mxu3 %vm671_vm1, %v1490_v51  ;;  %1530 = vmatmul.msk.f32.gmra.mxu1 %vm797_vm11, %v1498_v50 }
  0xe7   : > { %1523 = vmatmul.msk.f32.gmra.mxu3 %vm671_vm1, %v1491_v58  ;;  %1531 = vmatmul.msk.f32.gmra.mxu1 %vm797_vm11, %v1499_v57  ;;  %vm624_vm1 = vcmp.eq.s32.totalorder %v1891_v44, %v1971_v25 }
  0xe8   : > { %v1501_v9 = vsel %vm624_vm1, 1.0, %v1707_v46 }
  0xef   : > { %1532 = vmatmul.msk.f32.gmra.mxu1 %vm797_vm11, %v1500_v0  ;;  %v1126_v0 = vld [vmem:[%s2314_s7 + $0x8] sm:$0xff] }
  0xf5   : > { %v737_v8 = vpop.f32.mrf.mxu0 }
  0xf6   : > { %1040 = vmatmul.f32.vlgmr.msrb.gmra.mxu3 %v737_v8 }
  0xf7   : > { %1533 = vmatmul.msk.f32.gmra.mxu1 %vm797_vm11, %v1501_v9 }
  0xff   : > { %1534 = vmatmul.msk.f32.gmra.mxu1 %vm797_vm11, %v1502_v14 }
 0x107   : > { %1535 = vmatmul.msk.f32.gmra.mxu1 %vm797_vm11, %v1503_v19 }
 0x10c   : > { %v2130_v22 = vpop.f32.mrf.mxu1 }
 0x10f   : > { %1536 = vmatmul.msk.f32.gmra.mxu1 %vm797_vm11, %v1504_v24 }
 0x114   : > { %v2139_v25 = vpop.f32.mrf.mxu1 }
 0x117   : > { %1537 = vmatmul.msk.f32.gmra.mxu1 %vm797_vm11, %v1505_v26 }
 0x11c   : > { %v740_v28 = vpop.f32.mrf.mxu0  ;;  %v2144_v29 = vpop.f32.mrf.mxu1 }
 0x11d   : > { %1043 = vmatmul.f32.gmra.mxu3 %v740_v28 }
 0x11f   : > { %1538 = vmatmul.msk.f32.gmra.mxu1 %vm797_vm11, %v1506_v30 }
 0x124   : > { %v743_v32 = vpop.f32.mrf.mxu0  ;;  %v2149_v33 = vpop.f32.mrf.mxu1 }
 0x125   : > { %1046 = vmatmul.f32.gmra.mxu3 %v743_v32 }
 0x127   : > { %1539 = vmatmul.msk.f32.gmra.mxu1 %vm797_vm11, %v1507_v34  ;;  %vm1181_vm11 = vcmask 1043456  }
 0x128   : > { %1540 = vmatpush.msk.msrb.mxu0 %vm1181_vm11, %v1127_v62 }
 0x12a   : > { %1199 = vmatpush.msrb.mxu0 %v1126_v0 }
 0x12b   : > { %v2172_v49 = vpop.f32.mrf.mxu3 }
 0x12c   : > { %v746_v35 = vpop.f32.mrf.mxu0  ;;  %v863_v36 = vpop.f32.mrf.mxu1  ;;  %1200 = vmatpush.msrb.mxu0 %v1125_v1 }
 0x12d   : > { %975 = vmatmul.f32.vlgmr.msra.gmra.mxu2 %v863_v36  ;;  %1049 = vmatmul.f32.gmra.mxu3 %v746_v35  ;;  %v2153_v37 = vmul.f32 %v863_v36, %v737_v8 }
 0x134   : > { %v749_v38 = vpop.f32.mrf.mxu0  ;;  %v866_v39 = vpop.f32.mrf.mxu1 }
 0x135   : > { %978 = vmatmul.f32.gmra.mxu2 %v866_v39  ;;  %1052 = vmatmul.f32.gmra.mxu3 %v749_v38  ;;  %v2155_v40 = vmul.f32 %v866_v39, %v740_v28 }
 0x13c   : > { %v2157_v44 = vpop.f32.mrf.mxu0  ;;  %v869_v41 = vpop.f32.mrf.mxu1 }
 0x13d   : > { %981 = vmatmul.f32.gmra.mxu2 %v869_v41  ;;  %1055 = vmatmul.f32.gmra.mxu3 %v2157_v44  ;;  %v2160_v46 = vmul.f32 %v869_v41, %v743_v32 }
 0x144   : > { %v872_v42 = vpop.f32.mrf.mxu1 }
 0x145   : > { %984 = vmatmul.f32.gmra.mxu2 %v872_v42  ;;  %1058 = vmatmul.f32.gmra.mxu3 %v2130_v22  ;;  %v2163_v43 = vmul.f32 %v872_v42, %v746_v35 }
 0x14a   : > { %v770_v51 = vpop.f32.mrf.mxu3 }
 0x14c   : > { %v875_v45 = vpop.f32.mrf.mxu1 }
 0x14d   : > { %987 = vmatmul.f32.gmra.mxu2 %v875_v45  ;;  %1061 = vmatmul.f32.gmra.mxu3 %v2139_v25  ;;  %v2166_v47 = vmul.f32 %v875_v45, %v749_v38 }
 0x152   : > { %v773_v54 = vpop.f32.mrf.mxu3 }
 0x154   : > { %v2168_v48 = vpop.f32.mrf.mxu1 }
 0x155   : > { %990 = vmatmul.f32.gmra.mxu2 %v2168_v48  ;;  %1064 = vmatmul.f32.gmra.mxu3 %v2144_v29  ;;  %v916_v41 = vmul.f32 %v2168_v48, %v2157_v44 }
 0x15a   : > { %v776_v56 = vpop.f32.mrf.mxu3 }
 0x15c   : > { %v2174_v50 = vpop.f32.mrf.mxu1 }
 0x15d   : > { %993 = vmatmul.f32.gmra.mxu2 %v2174_v50  ;;  %1067 = vmatmul.f32.gmra.mxu3 %v2149_v33  ;;  %v917_v38 = vmul.f32 %v2174_v50, %v2130_v22 }
 0x162   : > { %v779_v58 = vpop.f32.mrf.mxu3 }
 0x164   : > { %v2178_v52 = vpop.f32.mrf.mxu1 }
 0x165   : > { %996 = vmatmul.f32.gmra.mxu2 %v2178_v52  ;;  %1070 = vmatmul.f32.gmra.mxu3 %v2172_v49  ;;  %v918_v35 = vmul.f32 %v2178_v52, %v2139_v25 }
 0x16a   : > { %v782_v60 = vpop.f32.mrf.mxu3 }
 0x16c   : > { %v2182_v53 = vpop.f32.mrf.mxu1 }
 0x16d   : > { %999 = vmatmul.f32.gmra.mxu2 %v2182_v53  ;;  %1073 = vmatmul.f32.gmra.mxu3 %v770_v51  ;;  %v919_v30 = vmul.f32 %v2182_v53, %v2144_v29 }
 0x174   : > { %v890_v55 = vpop.f32.mrf.mxu1 }
 0x175   : > { %1002 = vmatmul.f32.gmra.mxu2 %v890_v55  ;;  %1076 = vmatmul.f32.gmra.mxu3 %v773_v54  ;;  %v920_v26 = vmul.f32 %v890_v55, %v2149_v33 }
 0x179   : > { %v1041_v2 = vpop.f32.mrf.mxu3 }
 0x17c   : > { %v893_v57 = vpop.f32.mrf.mxu1 }
 0x17d   : > { %1005 = vmatmul.f32.gmra.mxu2 %v893_v57  ;;  %1079 = vmatmul.f32.gmra.mxu3 %v776_v56  ;;  %v921_v20 = vmul.f32 %v893_v57, %v2172_v49 }
 0x184   : > { %v896_v59 = vpop.f32.mrf.mxu1 }
 0x185   : > { %1008 = vmatmul.f32.gmra.mxu2 %v896_v59  ;;  %1082 = vmatmul.f32.gmra.mxu3 %v779_v58  ;;  %v922_v17 = vmul.f32 %v896_v59, %v770_v51 }
 0x18c   : > { %v899_v61 = vpop.f32.mrf.mxu1 }
 0x18d   : > { %1011 = vmatmul.f32.gmra.mxu2 %v899_v61  ;;  %1085 = vmatmul.f32.gmra.mxu3 %v782_v60  ;;  %v923_v14 = vmul.f32 %v899_v61, %v773_v54 }
 0x194   : > { %v902_v63 = vpop.f32.mrf.mxu1 }
 0x195   : > { %1014 = vmatmul.f32.gmra.mxu2 %v902_v63  ;;  %v924_v9 = vmul.f32 %v902_v63, %v776_v56 }
 0x19c   : > { %v905_v3 = vpop.f32.mrf.mxu1 }
 0x19d   : > { %1017 = vmatmul.f32.gmra.mxu2 %v905_v3  ;;  %v925_v8 = vmul.f32 %v905_v3, %v779_v58 }
 0x1a0   : > { %v1044_v4 = vpop.f32.mrf.mxu3 }
 0x1a4   : > { %v908_v5 = vpop.f32.mrf.mxu1 }
 0x1a5   : > { %1020 = vmatmul.f32.gmra.mxu2 %v908_v5  ;;  %v926_v6 = vmul.f32 %v908_v5, %v782_v60 }
 0x1a7   : > { %1340 = vmatpush.xpose.msrb.mxu2 %v926_v6 }
 0x1a8   : > { %v1047_v7 = vpop.f32.mrf.mxu3 }
 0x1ab   : > { %1341 = vmatpush.xpose.msrb.mxu2 %v925_v8 }
 0x1af   : > { %1342 = vmatpush.xpose.msrb.mxu2 %v924_v9 }
 0x1b0   : > { %v976_v11 = vpop.f32.mrf.mxu2  ;;  %v1050_v12 = vpop.f32.mrf.mxu3 }
 0x1b1   : > { %v1042_v13 = vadd.f32 %v1041_v2, %v976_v11 }
 0x1b3   : > { %v1093_v15 = vadd.f32 %v2197_v10, %v1042_v13  ;;  %1343 = vmatpush.xpose.msrb.mxu2 %v923_v14 }
 0x1b5   : > { %v1109_v16 = vmax.f32 %v1093_v15, 0.0 }
 0x1b7   : > { %1541 = vmatmul.msk.f32.vlgmr.msrb.gmra.mxu0 %vm1132_vm4, %v1109_v16  ;;  %1344 = vmatpush.xpose.msrb.mxu2 %v922_v17 }
 0x1b8   : > { %v979_v18 = vpop.f32.mrf.mxu2  ;;  %v1053_v21 = vpop.f32.mrf.mxu3 }
 0x1b9   : > { %v1045_v19 = vadd.f32 %v1044_v4, %v979_v18 }
 0x1bb   : > { %v1094_v23 = vadd.f32 %v2197_v10, %v1045_v19  ;;  %1345 = vmatpush.xpose.msrb.mxu2 %v921_v20 }
 0x1bd   : > { %v1110_v24 = vmax.f32 %v1094_v23, 0.0 }
 0x1bf   : > { %1542 = vmatmul.msk.f32.gmra.mxu0 %vm1132_vm4, %v1110_v24  ;;  %1346 = vmatpush.xpose.msrb.mxu2 %v920_v26 }
 0x1c0   : > { %v982_v27 = vpop.f32.mrf.mxu2  ;;  %v1056_v32 = vpop.f32.mrf.mxu3 }
 0x1c1   : > { %v1048_v28 = vadd.f32 %v1047_v7, %v982_v27 }
 0x1c3   : > { %v1095_v31 = vadd.f32 %v2197_v10, %v1048_v28  ;;  %1347 = vmatpush.xpose.msrb.mxu2 %v919_v30 }
 0x1c5   : > { %v1111_v34 = vmax.f32 %v1095_v31, 0.0 }
 0x1c7   : > { %1543 = vmatmul.msk.f32.gmra.mxu0 %vm1132_vm4, %v1111_v34  ;;  %1348 = vmatpush.xpose.msrb.mxu2 %v918_v35 }
 0x1c8   : > { %v985_v33 = vpop.f32.mrf.mxu2  ;;  %v1059_v42 = vpop.f32.mrf.mxu3 }
 0x1c9   : > { %v1051_v36 = vadd.f32 %v1050_v12, %v985_v33 }
 0x1cb   : > { %v1096_v39 = vadd.f32 %v2197_v10, %v1051_v36  ;;  %1349 = vmatpush.xpose.msrb.mxu2 %v917_v38 }
 0x1cd   : > { %v1112_v29 = vmax.f32 %v1096_v39, 0.0 }
 0x1cf   : > { %1544 = vmatmul.msk.f32.gmra.mxu0 %vm1132_vm4, %v1112_v29  ;;  %1350 = vmatpush.xpose.msrb.mxu2 %v916_v41 }
 0x1d0   : > { %v988_v25 = vpop.f32.mrf.mxu2  ;;  %v1062_v22 = vpop.f32.mrf.mxu3 }
 0x1d1   : > { %v1054_v45 = vadd.f32 %v1053_v21, %v988_v25 }
 0x1d3   : > { %v1097_v49 = vadd.f32 %v2197_v10, %v1054_v45  ;;  %1351 = vmatpush.xpose.msrb.mxu2 %v2166_v47 }
 0x1d5   : > { %v1113_v51 = vmax.f32 %v1097_v49, 0.0 }
 0x1d7   : > { %1545 = vmatmul.msk.f32.gmra.mxu0 %vm1132_vm4, %v1113_v51  ;;  %1352 = vmatpush.xpose.msrb.mxu2 %v2163_v43 }
 0x1d8   : > { %v991_v50 = vpop.f32.mrf.mxu2  ;;  %v1065_v47 = vpop.f32.mrf.mxu3 }
 0x1d9   : > { %v1057_v52 = vadd.f32 %v1056_v32, %v991_v50 }
 0x1db   : > { %v1098_v44 = vadd.f32 %v2197_v10, %v1057_v52  ;;  %1353 = vmatpush.xpose.msrb.mxu2 %v2160_v46 }
 0x1dd   : > { %v1114_v48 = vmax.f32 %v1098_v44, 0.0 }
 0x1df   : > { %1546 = vmatmul.msk.f32.gmra.mxu0 %vm1132_vm4, %v1114_v48  ;;  %1354 = vmatpush.xpose.msrb.mxu2 %v2155_v40 }
 0x1e0   : > { %v994_v53 = vpop.f32.mrf.mxu2  ;;  %v1068_v46 = vpop.f32.mrf.mxu3 }
 0x1e1   : > { %v1060_v54 = vadd.f32 %v1059_v42, %v994_v53 }
 0x1e3   : > { %v1099_v55 = vadd.f32 %v2197_v10, %v1060_v54  ;;  %1355 = vmatpush.xpose.msrb.mxu2 %v2153_v37 }
 0x1e5   : > { %v1115_v43 = vmax.f32 %v1099_v55, 0.0 }
 0x1e7   : > { %1547 = vmatmul.msk.f32.gmra.mxu0 %vm1132_vm4, %v1115_v43 }
 0x1e8   : > { %v997_v56 = vpop.f32.mrf.mxu2  ;;  %v1071_v63 = vpop.f32.mrf.mxu3 }
 0x1e9   : > { %v1063_v57 = vadd.f32 %v1062_v22, %v997_v56 }
 0x1eb   : > { %v1100_v58 = vadd.f32 %v2197_v10, %v1063_v57 }
 0x1ed   : > { %v1116_v59 = vmax.f32 %v1100_v58, 0.0 }
 0x1ef   : > { %1548 = vmatmul.msk.f32.gmra.mxu0 %vm1132_vm4, %v1116_v59 }
 0x1f0   : > { %v1000_v60 = vpop.f32.mrf.mxu2  ;;  %v1074_v3 = vpop.f32.mrf.mxu3 }
 0x1f1   : > { %v1066_v40 = vadd.f32 %v1065_v47, %v1000_v60 }
 0x1f3   : > { %v1101_v61 = vadd.f32 %v2197_v10, %v1066_v40 }
 0x1f5   : > { %v1117_v62 = vmax.f32 %v1101_v61, 0.0 }
 0x1f7   : > { %1549 = vmatmul.msk.f32.gmra.mxu0 %vm1132_vm4, %v1117_v62 }
 0x1f8   : > { %v1003_v37 = vpop.f32.mrf.mxu2  ;;  %v1077_v11 = vpop.f32.mrf.mxu3 }
 0x1f9   : > { %v1069_v0 = vadd.f32 %v1068_v46, %v1003_v37 }
 0x1fb   : > { %v1102_v1 = vadd.f32 %v2197_v10, %v1069_v0  ;;  %v1266_v0 = vld [vmem:[%s2316_s9] sm:$0x1] }
 0x1fc   : > { %1356 = vmatmul.f32.vlgmr.msrb.gmra.mxu2 %v1266_v0 }
 0x1fd   : > { %v1118_v2 = vmax.f32 %v1102_v1, 0.0 }
 0x1ff   : > { %1550 = vmatmul.msk.f32.gmra.mxu0 %vm1132_vm4, %v1118_v2 }
 0x200   : > { %v1006_v4 = vpop.f32.mrf.mxu2  ;;  %v1080_v17 = vpop.f32.mrf.mxu3 }
 0x201   : > { %v1072_v5 = vadd.f32 %v1071_v63, %v1006_v4 }
 0x203   : > { %v1103_v6 = vadd.f32 %v2197_v10, %v1072_v5 }
 0x205   : > { %v1119_v7 = vmax.f32 %v1103_v6, 0.0 }
 0x207   : > { %1551 = vmatmul.msk.f32.gmra.mxu0 %vm1132_vm4, %v1119_v7 }
 0x208   : > { %v1009_v8 = vpop.f32.mrf.mxu2  ;;  %v1083_v24 = vpop.f32.mrf.mxu3 }
 0x209   : > { %v1075_v9 = vadd.f32 %v1074_v3, %v1009_v8 }
 0x20b   : > { %v1104_v12 = vadd.f32 %v2197_v10, %v1075_v9 }
 0x20d   : > { %v1120_v13 = vmax.f32 %v1104_v12, 0.0 }
 0x20f   : > { %1552 = vmatmul.msk.f32.gmra.mxu0 %vm1132_vm4, %v1120_v13 }
 0x210   : > { %v1012_v14 = vpop.f32.mrf.mxu2  ;;  %v1086_v31 = vpop.f32.mrf.mxu3 }
 0x211   : > { %v1078_v15 = vadd.f32 %v1077_v11, %v1012_v14 }
 0x213   : > { %v1105_v16 = vadd.f32 %v2197_v10, %v1078_v15 }
 0x215   : > { %v1121_v18 = vmax.f32 %v1105_v16, 0.0 }
 0x217   : > { %1553 = vmatmul.msk.f32.gmra.mxu0 %vm1132_vm4, %v1121_v18 }
 0x218   : > { %v1015_v19 = vpop.f32.mrf.mxu2 }
 0x219   : > { %v1081_v20 = vadd.f32 %v1080_v17, %v1015_v19  ;;  %v1267_v19 = vld [vmem:[%s2317_s10] sm:$0x1] }
 0x21b   : > { %v1106_v21 = vadd.f32 %v2197_v10, %v1081_v20  ;;  %v1364_v20 = vpop.permute.xlu2 %1363 }
 0x21d   : > { %v1122_v23 = vmax.f32 %v1106_v21, 0.0 }
 0x21f   : > { %1554 = vmatmul.msk.f32.gmra.mxu0 %vm1132_vm4, %v1122_v23 }
 0x220   : > { %v1018_v26 = vpop.f32.mrf.mxu2 }
 0x221   : > { %v1084_v27 = vadd.f32 %v1083_v24, %v1018_v26  ;;  %v1366_v24 = vperm.slane %v1364_v20, 0 }
 0x223   : > { %v1107_v28 = vadd.f32 %v2197_v10, %v1084_v27 }
 0x225   : > { %v1123_v30 = vmax.f32 %v1107_v28, 0.0 }
 0x227   : > { %1555 = vmatmul.msk.f32.gmra.mxu0 %vm1132_vm4, %v1123_v30 }
 0x228   : > { %v1021_v32 = vpop.f32.mrf.mxu2 }
 0x229   : > { %v1087_v34 = vadd.f32 %v1086_v31, %v1021_v32 }
 0x22b   : > { %v1108_v35 = vadd.f32 %v2197_v10, %v1087_v34  ;;  %v1637_v10 = vld [vmem:[%s2315_s8] ss:$0 sm:$0xff] }
 0x22d   : > { %v1124_v33 = vmax.f32 %v1108_v35, 0.0 }
 0x22f   : > { %1556 = vmatmul.msk.f32.gmra.mxu0 %vm1132_vm4, %v1124_v33 }
 0x234   : > { %v2246_v36 = vpop.f32.mrf.mxu0 }
 0x235   : > { %v1203_v16 = vadd.f32 %v1637_v10, %v2246_v36 }
 0x237   : > { %v1250_v18 = vmax.f32 %v1203_v16, 0.0 }
 0x23c   : > { %v1205_v38 = vpop.f32.mrf.mxu0 }
 0x23d   : > { %v1206_v14 = vadd.f32 %v1637_v10, %v1205_v38 }
 0x23f   : > { %v1251_v17 = vmax.f32 %v1206_v14, 0.0 }
 0x244   : > { %v1208_v39 = vpop.f32.mrf.mxu0 }
 0x245   : > { %v1209_v12 = vadd.f32 %v1637_v10, %v1208_v39 }
 0x247   : > { %v1252_v15 = vmax.f32 %v1209_v12, 0.0 }
 0x24c   : > { %v1211_v29 = vpop.f32.mrf.mxu0 }
 0x24d   : > { %v1212_v9 = vadd.f32 %v1637_v10, %v1211_v29 }
 0x24f   : > { %v1253_v13 = vmax.f32 %v1212_v9, 0.0 }
 0x254   : > { %v1214_v41 = vpop.f32.mrf.mxu0 }
 0x255   : > { %v1215_v7 = vadd.f32 %v1637_v10, %v1214_v41 }
 0x257   : > { %v1254_v11 = vmax.f32 %v1215_v7, 0.0 }
 0x25c   : > { %v1217_v42 = vpop.f32.mrf.mxu0 }
 0x25d   : > { %v1218_v5 = vadd.f32 %v1637_v10, %v1217_v42 }
 0x25f   : > { %v1255_v8 = vmax.f32 %v1218_v5, 0.0 }
 0x264   : > { %v1220_v25 = vpop.f32.mrf.mxu0 }
 0x265   : > { %v1221_v3 = vadd.f32 %v1637_v10, %v1220_v25 }
 0x267   : > { %v1256_v6 = vmax.f32 %v1221_v3, 0.0 }
 0x26c   : > { %v1223_v45 = vpop.f32.mrf.mxu0 }
 0x26d   : > { %v1224_v1 = vadd.f32 %v1637_v10, %v1223_v45 }
 0x26f   : > { %v1257_v4 = vmax.f32 %v1224_v1, 0.0 }
 0x274   : > { %v1226_v49 = vpop.f32.mrf.mxu0 }
 0x275   : > { %v1227_v63 = vadd.f32 %v1637_v10, %v1226_v49 }
 0x277   : > { %v1258_v2 = vmax.f32 %v1227_v63, 0.0 }
 0x27c   : > { %v1229_v51 = vpop.f32.mrf.mxu0 }
 0x27d   : > { %v1230_v61 = vadd.f32 %v1637_v10, %v1229_v51 }
 0x27f   : > { %v1259_v37 = vmax.f32 %v1230_v61, 0.0  ;;  %v1357_v21 = vpop.f32.mrf.mxu2 }
 0x284   : > { %v1232_v22 = vpop.f32.mrf.mxu0 }
 0x285   : > { %v1233_v60 = vadd.f32 %v1637_v10, %v1232_v22 }
 0x287   : > { %v1260_v62 = vmax.f32 %v1233_v60, 0.0 }
 0x28c   : > { %v1235_v50 = vpop.f32.mrf.mxu0 }
 0x28d   : > { %v1236_v46 = vadd.f32 %v1637_v10, %v1235_v50 }
 0x28f   : > { %v1261_v40 = vmax.f32 %v1236_v46, 0.0 }
 0x294   : > { %v1238_v52 = vpop.f32.mrf.mxu0 }
 0x295   : > { %v1239_v57 = vadd.f32 %v1637_v10, %v1238_v52 }
 0x297   : > { %v1262_v59 = vmax.f32 %v1239_v57, 0.0 }
 0x29c   : > { %v1241_v44 = vpop.f32.mrf.mxu0 }
 0x29d   : > { %v1242_v43 = vadd.f32 %v1637_v10, %v1241_v44 }
 0x29f   : > { %v1263_v58 = vmax.f32 %v1242_v43, 0.0 }
 0x2a4   : > { %v1244_v48 = vpop.f32.mrf.mxu0 }
 0x2a5   : > { %v1245_v47 = vadd.f32 %v1637_v10, %v1244_v48 }
 0x2a7   : > { %v1264_v56 = vmax.f32 %v1245_v47, 0.0 }
 0x2ac   : > { %v1247_v53 = vpop.f32.mrf.mxu0 }
 0x2ad   : > { %v1248_v54 = vadd.f32 %v1637_v10, %v1247_v53 }
 0x2af   : > { %v1265_v55 = vmax.f32 %v1248_v54, 0.0 }
 0x2b1   : > { %1557 = vmatpush.xpose.msk.msra.mxu1 %vm1268_vm5, %v1265_v55 }
 0x2b5   : > { %1558 = vmatpush.xpose.msk.msra.mxu1 %vm1268_vm5, %v1264_v56 }
 0x2b9   : > { %1559 = vmatpush.xpose.msk.msra.mxu1 %vm1268_vm5, %v1263_v58 }
 0x2bd   : > { %1560 = vmatpush.xpose.msk.msra.mxu1 %vm1268_vm5, %v1262_v59 }
 0x2c1   : > { %1561 = vmatpush.xpose.msk.msra.mxu1 %vm1268_vm5, %v1261_v40 }
 0x2c5   : > { %1562 = vmatpush.xpose.msk.msra.mxu1 %vm1268_vm5, %v1260_v62 }
 0x2c9   : > { %1563 = vmatpush.xpose.msk.msra.mxu1 %vm1268_vm5, %v1259_v37 }
 0x2cd   : > { %1564 = vmatpush.xpose.msk.msra.mxu1 %vm1268_vm5, %v1258_v2 }
 0x2d1   : > { %1565 = vmatpush.xpose.msk.msra.mxu1 %vm1268_vm5, %v1257_v4 }
 0x2d5   : > { %1566 = vmatpush.xpose.msk.msra.mxu1 %vm1268_vm5, %v1256_v6 }
 0x2d9   : > { %1567 = vmatpush.xpose.msk.msra.mxu1 %vm1268_vm5, %v1255_v8 }
 0x2dd   : > { %1568 = vmatpush.xpose.msk.msra.mxu1 %vm1268_vm5, %v1254_v11 }
 0x2e1   : > { %1569 = vmatpush.xpose.msk.msra.mxu1 %vm1268_vm5, %v1253_v13 }
 0x2e5   : > { %1570 = vmatpush.xpose.msk.msra.mxu1 %vm1268_vm5, %v1252_v15 }
 0x2e9   : > { %1571 = vmatpush.xpose.msk.msra.mxu1 %vm1268_vm5, %v1251_v17 }
 0x2ed   : > { %1572 = vmatpush.xpose.msk.msra.mxu1 %vm1268_vm5, %v1250_v18 }
 0x2f0   : > { %1573 = vmatmul.msk.f32.vlgmr.msra.gmra.mxu1 %vm1268_vm5, %v1267_v19 }
 0x36d   : > { %v1337_v23 = vpop.f32.mrf.mxu1 }
 0x36e   : > { %v1358_v26 = vadd.f32 %v1357_v21, %v1337_v23 }
 0x370   : > { %v1367_v27 = vadd.f32 %v1366_v24, %v1358_v26 }
 0x372   : > { %v1368_v28 = vsub.f32 0.0, %v1367_v27 }
 0x374   : > { %v1369_v30 = vmul.f32 1.442695, %v1368_v28 }
 0x376   : > { %1638 = vpow2.f32 %v1369_v30 }
 0x37c   : > { %v1639_v31 = vpop.eup %1638 }
 0x37d   : > { %v1371_v32 = vadd.f32 1.0, %v1639_v31 }
 0x37f   : > { %1640 = vrcp.f32 %v1371_v32  ;;  %v1383_v36 = vand.u32 2147483648, %v1371_v32  ;;  %v1381_v39 = vand.u32 2147483647, %v1371_v32  ;;  %vm1377_vm7 = vweird.f32 %v1371_v32 }
 0x381   : > { %v1384_v41 = vor.u32 1.1754944e-38, %v1383_v36  ;;  %vm1382_vm9 = vcmp.eq.f32.partialorder %v1381_v39, 8.507059e+37 }
 0x385   : > { %v1641_v34 = vpop.eup %1640 }
 0x386   : > { %v1373_v35 = vmul.f32 %v1641_v34, %v1371_v32  ;;  %vm1378_vm6 = vweird.f32 %v1641_v34 }
 0x387   : > { %vm1379_vm8 = vmor %vm1377_vm7, %vm1378_vm6 }
 0x388   : > { %v1374_v33 = vsub.f32 1.0, %v1373_v35 }
 0x38a   : > { %v1375_v38 = vmul.f32 %v1641_v34, %v1374_v33 }
 0x38c   : > { %v1376_v29 = vadd.f32 %v1641_v34, %v1375_v38 }
 0x38e   : > { %v1380_v42 = vsel %vm1379_vm8, %v1641_v34, %v1376_v29 }
 0x38f   : > { %v1385_v25 = vsel %vm1382_vm9, %v1384_v41, %v1380_v42 }
 0x390   : > { %1387 = vst [vmem:[%s424_s18] sm:$0x1] %v1385_v25 }
 0x391   : > { %1669 = shalt.err (!%p1666_p3)
}
 0x392   : > { %1592 = dma.vmem_to_hbm [thread:$0]  (%p1814_p5), %s1400_s19, 16, %s1402_s20, %s1389_s27  }
 0x393 PF: > { %p1598_p4 = scmp.ge.s32.totalorder %s1704_s26, 2  ;;  %s1413_s29 = sand.u32 1, %s1692_s23  }
 0x394   : > { %s1414_s18 = scalar_lea.sflag [#allocation4], %s1413_s29 }
 0x395   : > { %p1595_p7 = pnand %p1598_p4, %p1818_p6 }
 0x397   : > { %p1596_p8 = pneg %p1595_p7 }
 0x399   : > { %1687 = dma.done.wait (%p1596_p8), %s1414_s18, 16  }
 0x39a   : > { %1689 = vsyncadd (%p1596_p8), %s1414_s18, 4294967280  ;;  %p24_p9 = scmp.ge.s32.totalorder %s1801_s28, 4   ;;  %s2324_s23 = smov %s1696_s24 }
 0x39b   : > { %s2325_s24 = smov %s1700_s25  ;;  %s2326_s25 = smov %s1812_s13 }
 0x39c   : > { %s2327_s26 = smov %s1801_s28  ;;  %26 = sbr.rel (!%p24_p9) target bundleno = 6 (0x6), region = 106 }
 0x3a1   :  { %1419 = vsyncpa [#allocation4], 1 }
 0x3a2   :  { %1421 = vsyncpa [#allocation4 + $0x1], 1 }

</bundles_post_ra>
